<compile_context>
chip_gen: v7x
topology: tpu7x:2x2x1
jax: 0.10.0
libtpu: 0.0.40
codegen_flags: <defaults>
</compile_context>

<pallas_src>
import functools

import jax
import jax.numpy as jnp
from jax import lax
from jax.experimental import pallas as pl
from jax.experimental.pallas import tpu as pltpu

LANES = 128
TARGET_BLOCK_ROWS = 2048   # (2048,128) f32 block = 1 MiB/buffer; ~5-6 MiB total VMEM


def _cdiv(a, b):
    return -(-a // b)


def _round_up(a, b):
    return _cdiv(a, b) * b


def _tensorcores_per_chip():
    # Best-effort detection of TensorCores a single Pallas grid can shard
    # across ("megacore"): 2 on v4/v7x, 1 on v5e/v6e.
    try:
        kind = jax.devices()[0].device_kind.lower()
    except Exception:
        return 1
    if "v7" in kind or "v4" in kind:
        return 2
    return 1


def _focal_kernel(logits_ref, label_ref, out_ref, acc_ref, *,
                  alpha, gamma, block_rows, inner_blocks, valid_rows):
    i = pl.program_id(1)

    @pl.when(i == 0)
    def _():
        acc_ref[...] = jnp.zeros_like(acc_ref)

    # Cast to f32 in-register; HBM traffic stays in the native input dtypes.
    x = logits_ref[...].astype(jnp.float32)
    is_pos = label_ref[...] == 1

    # z = x for positives, -x for negatives, so that pt = sigmoid(z) and
    #   ce    = -log(pt)    = softplus(-z) = max(-z,0) + log1p(exp(-|z|))
    #   focal = (1 - pt)^g  = sigmoid(-z)^g = exp(-g * softplus(z))
    # -> one shared exp/log1p plus one exp; no divide, no pow, any gamma.
    z = jnp.where(is_pos, x, -x)
    alpha_t = jnp.where(is_pos, alpha, 1.0 - alpha)

    e = jnp.exp(-jnp.abs(z))
    l1p = jnp.log1p(e)
    ce = jnp.maximum(-z, 0.0) + l1p            # softplus(-z) = -log(pt)
    if gamma == 0.0:
        focal = 1.0
    else:
        sp = jnp.maximum(z, 0.0) + l1p         # softplus(z)
        focal = jnp.exp((-gamma) * sp)         # (1 - pt)^gamma
    loss = alpha_t * (focal * ce)

    # Row-block raggedness: only the (at most one per partial) block whose
    # intended row range crosses `valid_rows` pays for masking; the hot path
    # is a plain full-block VPU accumulate.  row0 = numel/128-scale => int32 ok.
    row0 = (pl.program_id(0) * inner_blocks + i) * block_rows
    fully_valid = row0 + block_rows <= valid_rows

    @pl.when(fully_valid)
    def _():
        acc_ref[...] += loss

    @pl.when(jnp.logical_not(fully_valid))
    def _():
        ridx = lax.broadcasted_iota(jnp.int32, loss.shape, 0) + row0
        acc_ref[...] += jnp.where(ridx < valid_rows, loss, 0.0)

    @pl.when(i == pl.num_programs(1) - 1)
    def _():
        out_ref[...] = jnp.sum(acc_ref[...], axis=0, keepdims=True)[None]


def focal_loss_v2(logits, label, alpha=0.25, gamma=2.0, reduction="mean"):
    """Pallas TPU implementation of FocalLossV2.forward.

    Inputs are streamed in their NATIVE dtypes (no wrapper astype): this
    kernel is HBM-bound at f32, so bf16 logits and narrow labels (bf16 /
    int8 / bool — the label is only ever compared against 1) directly cut
    HBM bytes and wall-clock.
    """
    assert logits.shape == label.shape
    if reduction not in ("mean", "sum"):
        # TODO(synk): reduction='none' would need a full-size elementwise output.
        raise NotImplementedError("only 'mean' and 'sum' reductions are supported")

    total = int(logits.size)
    if total == 0:
        return jnp.zeros((), jnp.float32)

    x = logits.reshape(-1)
    y = label.reshape(-1)

    rem = total % LANES
    if rem:
        # TODO(synk): lane-ragged totals still pay one XLA pad pass; padding is
        # NEUTRAL (logit=-100 with label=0 makes the loss underflow to exactly
        # 0), so the kernel needs no per-element mask for the padded lanes.
        pad = LANES - rem
        x = jnp.pad(x, (0, pad), constant_values=-100.0)
        y = jnp.pad(y, (0, pad))
    rows = x.shape[0] // LANES
    x2 = x.reshape(rows, LANES)      # zero-copy reshape when rem == 0
    y2 = y.reshape(rows, LANES)

    # Sublane packing granule of the narrowest input dtype (f32:8, bf16:16,
    # int8/bool:32) keeps packed-dtype tiles unmasked / lowerable.
    min_bytes = min(x2.dtype.itemsize, y2.dtype.itemsize)
    granule = max(8, 32 // max(1, min_bytes))

    num_partials = _tensorcores_per_chip()
    nblocks_target = max(num_partials, _cdiv(rows, TARGET_BLOCK_ROWS))
    block_rows = min(rows, _round_up(_cdiv(rows, nblocks_target), granule))
    nblocks = _cdiv(rows, block_rows)
    if nblocks < num_partials:
        num_partials = 1
    inner = _cdiv(nblocks, num_partials)

    kernel = functools.partial(
        _focal_kernel,
        alpha=float(alpha), gamma=float(gamma),
        block_rows=block_rows, inner_blocks=inner, valid_rows=rows)

    def in_map(c, i):
        # Clamp trailing "duplicate" block slots (when nblocks % num_partials
        # != 0) onto the last real block; the kernel masks them to zero.
        blk = jnp.minimum(c * inner + i, nblocks - 1)
        return (blk, 0)

    n_elems = rows * LANES
    in_bytes = x2.size * x2.dtype.itemsize + y2.size * y2.dtype.itemsize
    cost = pl.CostEstimate(
        flops=14 * n_elems,
        transcendentals=3 * n_elems,
        bytes_accessed=in_bytes + num_partials * LANES * 4)

    partials = pl.pallas_call(
        kernel,
        out_shape=jax.ShapeDtypeStruct((num_partials, 1, LANES), jnp.float32),
        grid_spec=pltpu.PrefetchScalarGridSpec(
            num_scalar_prefetch=0,
            grid=(num_partials, inner),
            in_specs=[
                pl.BlockSpec((block_rows, LANES), in_map),
                pl.BlockSpec((block_rows, LANES), in_map),
            ],
            out_specs=pl.BlockSpec((1, 1, LANES), lambda c, i: (c, 0, 0)),
            scratch_shapes=[pltpu.VMEM((block_rows, LANES), jnp.float32)],
        ),
        compiler_params=pltpu.CompilerParams(
            dimension_semantics=("parallel", "arbitrary"),
            vmem_limit_bytes=32 * 1024 * 1024,
        ),
        cost_estimate=cost,
    )(x2, y2)

    result = jnp.sum(partials)
    if reduction == "mean":
        result = result / total
    return result


def _reference(logits, label, alpha=0.25, gamma=2.0, reduction="mean"):
    x = logits.astype(jnp.float32)
    is_pos = label.astype(jnp.float32) == 1.0
    p = jax.nn.sigmoid(x)
    log_p = jax.nn.log_sigmoid(x)       # stable log(sigmoid(x))
    log_1p = jax.nn.log_sigmoid(-x)     # stable log(1 - sigmoid(x))
    coeff = jnp.where(is_pos, alpha, 1.0 - alpha)
    term1 = (1.0 - p) ** gamma * log_p
    term2 = p ** gamma * log_1p
    loss = -coeff * jnp.where(is_pos, term1, term2)
    if reduction == "mean":
        return jnp.mean(loss)
    return jnp.sum(loss)


if __name__ == "__main__":
    key = jax.random.PRNGKey(0)
    k1, k2, k3, k4 = jax.random.split(key, 4)

    # NCHW shapes consistent with a dense binary/sigmoid prediction head.
    B, C, H, W = 2, 4, 16, 16
    logits = jax.random.normal(k1, (B, C, H, W), dtype=jnp.float32) * 2.0
    label = jax.random.bernoulli(k2, p=0.3, shape=(B, C, H, W)).astype(jnp.float32)

    loss = jax.block_until_ready(
        focal_loss_v2(logits, label, alpha=0.25, gamma=2.0, reduction="mean"))
    ref = _reference(logits, label, alpha=0.25, gamma=2.0, reduction="mean")
    assert jnp.allclose(loss, ref, rtol=1e-5, atol=1e-6), (loss, ref)

    loss_sum = jax.block_until_ready(
        focal_loss_v2(logits, label, alpha=0.25, gamma=2.0, reduction="sum"))
    ref_sum = _reference(logits, label, alpha=0.25, gamma=2.0, reduction="sum")
    assert jnp.allclose(loss_sum, ref_sum, rtol=1e-5, atol=1e-4), (loss_sum, ref_sum)

    # Ragged total (not a multiple of 128) exercises the neutral-pad path.
    lr = jax.random.normal(k3, (2, 3, 7, 11), dtype=jnp.float32)
    yr = jax.random.bernoulli(k4, p=0.5, shape=(2, 3, 7, 11)).astype(jnp.float32)
    loss_r = jax.block_until_ready(focal_loss_v2(lr, yr, alpha=0.5, gamma=2.0))
    ref_r = _reference(lr, yr, alpha=0.5, gamma=2.0)
    assert jnp.allclose(loss_r, ref_r, rtol=1e-5, atol=1e-6), (loss_r, ref_r)

    # bf16 logits: native-dtype DMA (half the logit HBM bytes), f32 math in-register.
    lb = logits.astype(jnp.bfloat16)
    loss_b = jax.block_until_ready(focal_loss_v2(lb, label))
    ref_b = _reference(lb, label)
    assert jnp.allclose(loss_b, ref_b, rtol=1e-4, atol=1e-5), (loss_b, ref_b)

    print("KERNEL_OK")
</pallas_src>

<mosaic_0001>
module attributes {stable_mosaic.version = 11 : i64} {
  func.func @_focal_kernel(%arg0: i32, %arg1: i32, %arg2: memref<16x128xf32, #tpu.memory_space<vmem>>, %arg3: memref<16x128xf32, #tpu.memory_space<vmem>>, %arg4: memref<1x1x128xf32, #tpu.memory_space<vmem>>, %arg5: memref<16x128xf32, #tpu.memory_space<vmem>>) attributes {dimension_semantics = [#tpu.dimension_semantics<parallel>, #tpu.dimension_semantics<arbitrary>], iteration_bounds = array<i64: 1, 1>, scalar_prefetch = 0 : i64, scratch_operands = 1 : i64, tpu.core_type = #tpu.core_type<tc>, window_params = [{transform_indices = @transform_0, window_bounds = array<i64: 16, 128>}, {transform_indices = @transform_1, window_bounds = array<i64: 16, 128>}, {transform_indices = @transform_2, window_bounds = array<i64: 1, 1, 128>}]} {
    %c0_i32 = arith.constant 0 : i32
    %0 = arith.cmpi eq, %arg1, %c0_i32 : i32
    %1 = arith.extui %0 : i1 to i32
    %c0_i32_0 = arith.constant 0 : i32
    %2 = arith.cmpi ne, %1, %c0_i32_0 : i32
    scf.if %2 {
      %cst_18 = arith.constant 0.000000e+00 : f32
      %44 = vector.broadcast %cst_18 : f32 to vector<16x128xf32>
      %c0_19 = arith.constant 0 : index
      %c0_20 = arith.constant 0 : index
      %45 = vector.load %arg5[%c0_19, %c0_20] : memref<16x128xf32, #tpu.memory_space<vmem>>, vector<16x128xf32>
      tpu.vector_store %arg5[%c0_19, %c0_20], %44 {strides = array<i32>} : memref<16x128xf32, #tpu.memory_space<vmem>>, vector<16x128xf32>,
    } else {
    }
    %c0 = arith.constant 0 : index
    %c0_1 = arith.constant 0 : index
    %3 = vector.load %arg2[%c0, %c0_1] : memref<16x128xf32, #tpu.memory_space<vmem>>, vector<16x128xf32>
    %c0_2 = arith.constant 0 : index
    %c0_3 = arith.constant 0 : index
    %4 = vector.load %arg3[%c0_2, %c0_3] : memref<16x128xf32, #tpu.memory_space<vmem>>, vector<16x128xf32>
    %cst = arith.constant 1.000000e+00 : f32
    %5 = vector.broadcast %cst : f32 to vector<16x128xf32>
    %6 = arith.cmpf oeq, %4, %5 : vector<16x128xf32>
    %cst_4 = arith.constant 0.000000e+00 : f32
    %7 = vector.broadcast %cst_4 : f32 to vector<16x128xf32>
    %8 = arith.subf %7, %3 : vector<16x128xf32>
    %9 = arith.select %6, %3, %8 : vector<16x128xi1>, vector<16x128xf32>
    %cst_5 = arith.constant 2.500000e-01 : f32
    %cst_6 = arith.constant 7.500000e-01 : f32
    %10 = vector.broadcast %cst_5 : f32 to vector<16x128xf32>
    %11 = vector.broadcast %cst_6 : f32 to vector<16x128xf32>
    %12 = arith.select %6, %10, %11 : vector<16x128xi1>, vector<16x128xf32>
    %13 = math.absf %9 : vector<16x128xf32>
    %cst_7 = arith.constant 0.000000e+00 : f32
    %14 = vector.broadcast %cst_7 : f32 to vector<16x128xf32>
    %15 = arith.subf %14, %13 : vector<16x128xf32>
    %16 = math.exp %15 : vector<16x128xf32>
    %17 = math.log1p %16 : vector<16x128xf32>
    %cst_8 = arith.constant 0.000000e+00 : f32
    %18 = vector.broadcast %cst_8 : f32 to vector<16x128xf32>
    %19 = arith.subf %18, %9 : vector<16x128xf32>
    %cst_9 = arith.constant 0.000000e+00 : f32
    %20 = vector.broadcast %cst_9 : f32 to vector<16x128xf32>
    %21 = arith.maximumf %19, %20 : vector<16x128xf32>
    %22 = arith.addf %21, %17 : vector<16x128xf32>
    %cst_10 = arith.constant 0.000000e+00 : f32
    %23 = vector.broadcast %cst_10 : f32 to vector<16x128xf32>
    %24 = arith.maximumf %9, %23 : vector<16x128xf32>
    %25 = arith.addf %24, %17 : vector<16x128xf32>
    %cst_11 = arith.constant -2.000000e+00 : f32
    %26 = vector.broadcast %cst_11 : f32 to vector<16x128xf32>
    %27 = arith.mulf %26, %25 : vector<16x128xf32>
    %28 = math.exp %27 : vector<16x128xf32>
    %29 = arith.mulf %28, %22 : vector<16x128xf32>
    %30 = arith.mulf %12, %29 : vector<16x128xf32>
    %c1_i32 = arith.constant 1 : i32
    %31 = arith.muli %arg0, %c1_i32 : i32
    %32 = arith.addi %31, %arg1 : i32
    %c16_i32 = arith.constant 16 : i32
    %33 = arith.muli %32, %c16_i32 : i32
    %c16_i32_12 = arith.constant 16 : i32
    %34 = arith.addi %33, %c16_i32_12 : i32
    %c16_i32_13 = arith.constant 16 : i32
    %35 = arith.cmpi sle, %34, %c16_i32_13 : i32
    %36 = arith.extui %35 : i1 to i32
    %c0_i32_14 = arith.constant 0 : i32
    %37 = arith.cmpi ne, %36, %c0_i32_14 : i32
    scf.if %37 {
      %c0_18 = arith.constant 0 : index
      %c0_19 = arith.constant 0 : index
      %44 = vector.load %arg5[%c0_18, %c0_19] : memref<16x128xf32, #tpu.memory_space<vmem>>, vector<16x128xf32>
      %45 = arith.addf %44, %30 : vector<16x128xf32>
      %c0_20 = arith.constant 0 : index
      %c0_21 = arith.constant 0 : index
      %46 = vector.load %arg5[%c0_20, %c0_21] : memref<16x128xf32, #tpu.memory_space<vmem>>, vector<16x128xf32>
      tpu.vector_store %arg5[%c0_20, %c0_21], %45 {strides = array<i32>} : memref<16x128xf32, #tpu.memory_space<vmem>>, vector<16x128xf32>,
    } else {
    }
    %true = arith.constant true
    %38 = arith.xori %35, %true : i1
    %39 = arith.extui %38 : i1 to i32
    %c0_i32_15 = arith.constant 0 : i32
    %40 = arith.cmpi ne, %39, %c0_i32_15 : i32
    scf.if %40 {
      %44 = tpu.iota {dimensions = array<i32: 0>} : vector<16x128xi32>
      %45 = vector.broadcast %33 : i32 to vector<16x128xi32>
      %46 = arith.addi %44, %45 : vector<16x128xi32>
      %c0_18 = arith.constant 0 : index
      %c0_19 = arith.constant 0 : index
      %47 = vector.load %arg5[%c0_18, %c0_19] : memref<16x128xf32, #tpu.memory_space<vmem>>, vector<16x128xf32>
      %c16_i32_20 = arith.constant 16 : i32
      %48 = vector.broadcast %c16_i32_20 : i32 to vector<16x128xi32>
      %49 = arith.cmpi slt, %46, %48 : vector<16x128xi32>
      %cst_21 = arith.constant 0.000000e+00 : f32
      %50 = vector.broadcast %cst_21 : f32 to vector<16x128xf32>
      %51 = arith.select %49, %30, %50 : vector<16x128xi1>, vector<16x128xf32>
      %52 = arith.addf %47, %51 : vector<16x128xf32>
      %c0_22 = arith.constant 0 : index
      %c0_23 = arith.constant 0 : index
      %53 = vector.load %arg5[%c0_22, %c0_23] : memref<16x128xf32, #tpu.memory_space<vmem>>, vector<16x128xf32>
      tpu.vector_store %arg5[%c0_22, %c0_23], %52 {strides = array<i32>} : memref<16x128xf32, #tpu.memory_space<vmem>>, vector<16x128xf32>,
    } else {
    }
    %c0_i32_16 = arith.constant 0 : i32
    %41 = arith.cmpi eq, %arg1, %c0_i32_16 : i32
    %42 = arith.extui %41 : i1 to i32
    %c0_i32_17 = arith.constant 0 : i32
    %43 = arith.cmpi ne, %42, %c0_i32_17 : i32
    scf.if %43 {
      %c0_18 = arith.constant 0 : index
      %c0_19 = arith.constant 0 : index
      %44 = vector.load %arg5[%c0_18, %c0_19] : memref<16x128xf32, #tpu.memory_space<vmem>>, vector<16x128xf32>
      %cst_20 = arith.constant dense<0.000000e+00> : vector<128xf32>
      %45 = vector.multi_reduction <add>, %44, %cst_20 [0] : vector<16x128xf32> to vector<128xf32>
      %46 = vector.shape_cast %45 : vector<128xf32> to vector<1x128xf32>
      %47 = vector.shape_cast %46 : vector<1x128xf32> to vector<1x1x128xf32>
      %c0_21 = arith.constant 0 : index
      %c0_22 = arith.constant 0 : index
      %c0_23 = arith.constant 0 : index
      %48 = vector.load %arg4[%c0_21, %c0_22, %c0_23] : memref<1x1x128xf32, #tpu.memory_space<vmem>>, vector<1x1x128xf32>
      tpu.vector_store %arg4[%c0_21, %c0_22, %c0_23], %47 {strides = array<i32>} : memref<1x1x128xf32, #tpu.memory_space<vmem>>, vector<1x1x128xf32>,
    } else {
    }
    return
  }
  func.func @transform_0(%arg0: i32, %arg1: i32) -> (i32, i32) {
    %c1_i32 = arith.constant 1 : i32
    %0 = arith.muli %arg0, %c1_i32 : i32
    %1 = arith.addi %0, %arg1 : i32
    %c0_i32 = arith.constant 0 : i32
    %2 = arith.minsi %1, %c0_i32 : i32
    %c0_i32_0 = arith.constant 0 : i32
    %c0_i32_1 = arith.constant 0 : i32
    return %2, %c0_i32_0 : i32, i32
  }
  func.func @transform_1(%arg0: i32, %arg1: i32) -> (i32, i32) {
    %c1_i32 = arith.constant 1 : i32
    %0 = arith.muli %arg0, %c1_i32 : i32
    %1 = arith.addi %0, %arg1 : i32
    %c0_i32 = arith.constant 0 : i32
    %2 = arith.minsi %1, %c0_i32 : i32
    %c0_i32_0 = arith.constant 0 : i32
    %c0_i32_1 = arith.constant 0 : i32
    return %2, %c0_i32_0 : i32, i32
  }
  func.func @transform_2(%arg0: i32, %arg1: i32) -> (i32, i32, i32) {
    %c0_i32 = arith.constant 0 : i32
    %c0_i32_0 = arith.constant 0 : i32
    %c0_i32_1 = arith.constant 0 : i32
    return %arg0, %c0_i32, %c0_i32_0 : i32, i32, i32
  }
}

</mosaic_0001>

<bundles_post_ra>
// kernel: tpu_custom_call.1
= control target key start
LH: loop header
LB: loop body
LE: loop exit
PB: predicated region body
PF: predicated region fallthrough
CT: control target
= control target key end

     0   :  { %7 = vsyncpa [#allocation4], 0  ;;  %s341_s0 = inlined_call_operand.hbm [shape: f32[16,128], index: 0, kind: input, shape index: {}]   ;;  %s342_s1 = inlined_call_operand.hbm [shape: f32[16,128], index: 1, kind: input, shape index: {}]   ;;  %s343_s2 = inlined_call_operand.hbm [shape: f32[1,1,128], index: 2, kind: output, shape index: {}]  }
   0x1   :  { %8 = vsyncpa [#allocation7], 0 }
   0x2   :  { %9 = vsyncpa [#allocation5], 0  ;;  %s280_s9 = smov [#allocation3]   ;;  %s208_s13 = scalar_lea.hbm %s341_s0, 256 }
   0x3   :  { %s21_s10 = sshll.u32 %s280_s9, 4  ;;  %p209_p0 = scmp.ne.s32.totalorder %s341_s0, %s208_s13  ;;  %s22_s10 = int_to_ptr.vmem [resolvable:$true] %s21_s10 }
   0x4   :  { %p212_p1 = scmp.lt.u32.totalorder %s208_s13, %s341_s0 }
   0x6   :  { %p214_p2 = pnand %p212_p1, %p209_p0 }
   0x8   :  { %217 = shalt.err (!%p214_p2)
}
   0x9   :  { %s218_s18 = scalar_lea.vmem %s22_s10, 256  ;;  %p223_p4 = scmp.lt.s32.totalorder %s22_s10, %s22_s10 }
   0xa   :  { %p219_p3 = scmp.ne.s32.totalorder %s22_s10, %s218_s18  ;;  %p224_p5 = scmp.lt.s32.totalorder %s218_s18, %s218_s18 }
   0xc   :  { %p225_p6 = por %p224_p5, %p223_p4 }
   0xe   :  { %p226_p7 = pnand %p225_p6, %p219_p3 }
  0x10   :  { %229 = shalt.err (!%p226_p7)
}
  0x11   :  { %s281_s19 = smov 128   ;;  %s282_s20 = smov 8  }
  0x12   :  { %27 = dma.hbm_to_vmem [thread:$0]  %s341_s0, 256, %s22_s10, [#allocation4], %s281_s19, %s281_s19, %s282_s20  }
  0x13   :  { %s283_s23 = smov [#allocation6]   ;;  %s230_s27 = scalar_lea.hbm %s342_s1, 256 }
  0x14   :  { %s39_s24 = sshll.u32 %s283_s23, 4  ;;  %p231_p8 = scmp.ne.s32.totalorder %s342_s1, %s230_s27  ;;  %s40_s24 = int_to_ptr.vmem [resolvable:$true] %s39_s24 }
  0x15   :  { %p234_p9 = scmp.lt.u32.totalorder %s230_s27, %s342_s1 }
  0x17   :  { %p236_p10 = pnand %p234_p9, %p231_p8 }
  0x19   :  { %239 = shalt.err (!%p236_p10)
}
  0x1a   :  { %s240_s4 = scalar_lea.vmem %s40_s24, 256  ;;  %p245_p12 = scmp.lt.s32.totalorder %s40_s24, %s40_s24 }
  0x1b   :  { %p241_p11 = scmp.ne.s32.totalorder %s40_s24, %s240_s4  ;;  %p246_p13 = scmp.lt.s32.totalorder %s240_s4, %s240_s4 }
  0x1d   :  { %p247_p0 = por %p246_p13, %p245_p12 }
  0x1f   :  { %p248_p1 = pnand %p247_p0, %p241_p11 }
  0x21   :  { %251 = shalt.err (!%p248_p1)
}
  0x22   :  { %45 = dma.hbm_to_vmem [thread:$0]  %s342_s1, 256, %s40_s24, [#allocation7], %s281_s19, %s281_s19, %s282_s20  }
  0x23   :  { %274 = dma.done.wait [#allocation4], 256  }
  0x24   :  { %275 = vsyncadd [#allocation4], 4294967040 }
  0x25   :  { %276 = dma.done.wait [#allocation7], 256  }
  0x26   :  { %277 = vsyncadd [#allocation7], 4294967040  ;;  %v66_v0 = vld [vmem:[#allocation3] sm:$0xff]  ;;  %v67_v1 = vld [vmem:[#allocation3 + $0x8] sm:$0xff]  ;;  %v284_v47 = vmov 0.75   ;;  %s285_s1 = smov [#allocation8]  }
  0x27   :  { %v68_v2 = vld [vmem:[#allocation6] sm:$0xff]  ;;  %v69_v3 = vld [vmem:[#allocation6 + $0x8] sm:$0xff]  ;;  %v72_v4 = vsub.f32 0.0, %v66_v0  ;;  %v73_v5 = vsub.f32 0.0, %v67_v1  ;;  %s176_s6 = sshll.u32 %s285_s1, 4  ;;  %s177_s6 = int_to_ptr.vmem [resolvable:$true] %s176_s6 }
  0x28   :  { %vm70_vm0 = vcmp.eq.f32.partialorder %v68_v2, 1.0  ;;  %vm71_vm1 = vcmp.eq.f32.partialorder %v69_v3, 1.0  ;;  %s252_s7 = scalar_lea.vmem %s177_s6, 16  ;;  %s256_s8 = scalar_lea.vmem %s177_s6, 32 }
  0x29   :  { %v74_v6 = vsel %vm70_vm0, %v66_v0, %v72_v4  ;;  %v75_v7 = vsel %vm71_vm1, %v67_v1, %v73_v5  ;;  %v76_v48 = vsel %vm70_vm0, 0.25, %v284_v47  ;;  %v77_v50 = vsel %vm71_vm1, 0.25, %v284_v47  ;;  %p253_p2 = scmp.ne.s32.totalorder %s177_s6, %s252_s7  ;;  %p257_p3 = scmp.lt.s32.totalorder %s177_s6, %s177_s6 }
  0x2a   :  { %v78_v8 = vand.u32 2147483647, %v74_v6  ;;  %v79_v9 = vand.u32 2147483647, %v75_v7  ;;  %v110_v27 = vmax.f32 %v74_v6, 0.0  ;;  %v111_v30 = vmax.f32 %v75_v7, 0.0  ;;  %p258_p4 = scmp.lt.s32.totalorder %s256_s8, %s252_s7 }
  0x2b   :  { %v104_v39 = vsub.f32 0.0, %v74_v6  ;;  %v105_v41 = vsub.f32 0.0, %v75_v7 }
  0x2c   :  { %v80_v10 = vsub.f32 0.0, %v78_v8  ;;  %v81_v11 = vsub.f32 0.0, %v79_v9  ;;  %p259_p5 = por %p258_p4, %p257_p3 }
  0x2d   :  { %v106_v42 = vmax.f32 %v104_v39, 0.0  ;;  %v107_v43 = vmax.f32 %v105_v41, 0.0 }
  0x2e   :  { %v82_v12 = vmul.f32 1.442695, %v80_v10  ;;  %v84_v13 = vmul.f32 1.442695, %v81_v11  ;;  %p260_p6 = pnand %p259_p5, %p253_p2 }
  0x30   :  { %196 = vpow2.f32 %v82_v12 }
  0x31   :  { %198 = vpow2.f32 %v84_v13 }
  0x3a   :  { %v197_v14 = vpop.eup %196 }
  0x3b   :  { %v199_v15 = vpop.eup %198  ;;  %v86_v16 = vadd.f32 1.0, %v197_v14  ;;  %v89_v18 = vmul.f32 -0.5, %v197_v14  ;;  %v92_v21 = vand.u32 2147483647, %v197_v14 }
  0x3c   :  { %v95_v17 = vadd.f32 1.0, %v199_v15  ;;  %v98_v19 = vmul.f32 -0.5, %v199_v15  ;;  %v101_v23 = vand.u32 2147483647, %v199_v15 }
  0x3d   :  { %200 = vlog2.f32 %v86_v16  ;;  %v90_v20 = vadd.f32 1.0, %v89_v18  ;;  %vm93_vm2 = vcmp.lt.f32.partialorder %v92_v21, 0.0004427343 }
  0x3e   :  { %202 = vlog2.f32 %v95_v17  ;;  %v99_v22 = vadd.f32 1.0, %v98_v19  ;;  %vm102_vm3 = vcmp.lt.f32.partialorder %v101_v23, 0.0004427343 }
  0x3f   :  { %v91_v24 = vmul.f32 %v197_v14, %v90_v20 }
  0x40   :  { %v100_v26 = vmul.f32 %v199_v15, %v99_v22 }
  0x47   :  { %v201_v25 = vpop.eup %200 }
  0x48   :  { %v203_v28 = vpop.eup %202  ;;  %v88_v29 = vmul.f32 0.6931472, %v201_v25 }
  0x49   :  { %v97_v31 = vmul.f32 0.6931472, %v203_v28 }
  0x4a   :  { %v94_v32 = vsel %vm93_vm2, %v91_v24, %v88_v29 }
  0x4b   :  { %v103_v33 = vsel %vm102_vm3, %v100_v26, %v97_v31  ;;  %v112_v34 = vadd.f32 %v110_v27, %v94_v32  ;;  %v108_v44 = vadd.f32 %v106_v42, %v94_v32 }
  0x4c   :  { %v113_v35 = vadd.f32 %v111_v30, %v103_v33  ;;  %v109_v45 = vadd.f32 %v107_v43, %v103_v33 }
  0x4d   :  { %v114_v36 = vmul.f32 -2.0, %v112_v34 }
  0x4e   :  { %v115_v37 = vmul.f32 -2.0, %v113_v35 }
  0x4f   :  { %v116_v38 = vmul.f32 1.442695, %v114_v36 }
  0x50   :  { %v118_v40 = vmul.f32 1.442695, %v115_v37 }
  0x51   :  { %204 = vpow2.f32 %v116_v38 }
  0x52   :  { %206 = vpow2.f32 %v118_v40 }
  0x5b   :  { %v205_v46 = vpop.eup %204 }
  0x5c   :  { %v207_v49 = vpop.eup %206  ;;  %v120_v51 = vmul.f32 %v205_v46, %v108_v44 }
  0x5d   :  { %v121_v52 = vmul.f32 %v207_v49, %v109_v45 }
  0x5e   :  { %v122_v53 = vmul.f32 %v120_v51, %v76_v48 }
  0x5f   :  { %v123_v54 = vmul.f32 %v121_v52, %v77_v50 }
  0x61   :  { %v162_v55 = vadd.f32 %v123_v54, %v122_v53 }
  0x63   :  { %v163_v56 = vrot.slane %v162_v55, 4 }
  0x65   :  { %v164_v57 = vadd.f32 %v163_v56, %v162_v55 }
  0x67   :  { %v165_v58 = vrot.slane %v164_v57, 2 }
  0x69   :  { %v166_v59 = vadd.f32 %v165_v58, %v164_v57 }
  0x6b   :  { %v167_v60 = vrot.slane %v166_v59, 1 }
  0x6d   :  { %v168_v61 = vadd.f32 %v167_v60, %v166_v59 }
  0x6f   :  { %169 = vst [vmem:[#allocation8] sm:$0x1] %v168_v61 }
  0x70   :  { %263 = shalt.err (!%p260_p6)
}
  0x71   :  { %s264_s11 = scalar_lea.hbm %s343_s2, 16 }
  0x72   :  { %p265_p7 = scmp.ne.s32.totalorder %s343_s2, %s264_s11  ;;  %p268_p8 = scmp.lt.u32.totalorder %s264_s11, %s343_s2 }
  0x74   :  { %p270_p9 = pnand %p268_p8, %p265_p7 }
  0x76   :  { %273 = shalt.err (!%p270_p9)
}
  0x77   :  { %179 = dma.vmem_to_hbm [thread:$0]  %s177_s6, 16, %s343_s2, [#allocation5]  }
  0x78   :  { %278 = dma.done.wait [#allocation5], 16  }
  0x79   :  { %279 = vsyncadd [#allocation5], 4294967280 }
  0x7a   :  { %183 = vsyncpa [#allocation4], 1 }
  0x7b   :  { %184 = vsyncpa [#allocation7], 1 }
  0x7c   :  { %185 = vsyncpa [#allocation5], 1 }

</bundles_post_ra>
